<compile_context>
chip_gen: v6e
topology: v6e:2x2x1
jax: 0.10.0
libtpu: 0.0.40
codegen_flags: <defaults>
</compile_context>

<pallas_src>
import functools

import jax
import jax.numpy as jnp
from jax.experimental import pallas as pl
from jax.experimental.pallas import tpu as pltpu

_MIB = 1 << 20


def _round_up(x, m):
    return ((x + m - 1) // m) * m


# --------------------------------------------------------------------------
# Kernel 1: fc1 (W1 streamed over gene K tiles) + folded BN + ReLU + fc21 +
#           masked softmax.  Produces h (bf16) and pi (f32).
# --------------------------------------------------------------------------
def _h_pi_kernel(x_ref, w1_ref, scale_ref, shift_ref, w21_ref, b21_ref,
                 pi_ref, h_ref, acc_ref, *, k_valid):
    g = pl.program_id(1)

    @pl.when(g == 0)
    def _():
        acc_ref[...] = jnp.zeros_like(acc_ref)

    # Partial fc1 contraction for this gene K tile (bf16 MXU, f32 accumulate).
    acc_ref[...] += jnp.dot(x_ref[...], w1_ref[...],
                            preferred_element_type=jnp.float32)

    @pl.when(g == pl.num_programs(1) - 1)
    def _():
        # Folded BatchNorm (inference) + fc1 bias + ReLU.
        h = jnp.maximum(acc_ref[...] * scale_ref[...] + shift_ref[...], 0.0)
        h_bf = h.astype(h_ref.dtype)
        h_ref[...] = h_bf
        # fc21 + softmax over the k valid lanes (padded lanes masked out).
        logits = jnp.dot(h_bf, w21_ref[...],
                         preferred_element_type=jnp.float32) + b21_ref[...]
        col = jax.lax.broadcasted_iota(jnp.int32, logits.shape, 1)
        logits = jnp.where(col < k_valid, logits, jnp.float32(-1e30))
        m = jnp.max(logits, axis=-1, keepdims=True)
        e = jnp.exp(logits - m)
        pi_ref[...] = (e / jnp.sum(e, axis=-1, keepdims=True)).astype(pi_ref.dtype)


# --------------------------------------------------------------------------
# Kernel 2: fc22, W22 / b22 / mu streamed per output-gene tile.
# --------------------------------------------------------------------------
def _mu_kernel(h_ref, w22_ref, b22_ref, mu_ref):
    mu = jnp.dot(h_ref[...], w22_ref[...],
                 preferred_element_type=jnp.float32) + b22_ref[...]
    mu_ref[...] = mu.astype(mu_ref.dtype)


# --------------------------------------------------------------------------
# Forward on pre-padded operands (runs under jit; all tile sizes static).
# --------------------------------------------------------------------------
def _wencoder_forward_padded(x_p, w1_p, scale_p, shift_p, w21_p, b21_p,
                             w22_p, b22_p, *, B, genes, k, tm, tg, tn,
                             h_pad, k_pad, compute_dtype):
    f32 = jnp.float32
    b_pad, genes_pad = x_p.shape
    n_gk = genes_pad // tg          # gene K tiles for fc1
    n_gt = genes_pad // tn          # output-gene tiles for fc22

    # ---------------- call 1: h (bf16) and pi ----------------
    vmem1 = (
        2 * tm * tg * 2            # x tiles (bf16, double-buffered)
        + 2 * tg * h_pad * 2       # streamed W1 tiles (bf16)
        + 2 * 2 * h_pad * 4        # scale / shift (f32, grid-invariant)
        + 2 * h_pad * k_pad * 2    # W21 (bf16, grid-invariant)
        + 2 * k_pad * 4            # b21
        + 2 * tm * k_pad * 4       # pi out
        + 2 * tm * h_pad * 2       # h out (bf16)
        + tm * h_pad * 4           # f32 accumulator scratch
    )
    vmem1_limit = int(min(48 * _MIB, max(32 * _MIB, 2 * vmem1 + 2 * _MIB)))

    flops1 = 2 * b_pad * genes_pad * h_pad + 2 * b_pad * h_pad * k_pad
    bytes1 = (x_p.size * 2 + w1_p.size * 2 + w21_p.size * 2
              + (scale_p.size + shift_p.size + b21_p.size) * 4
              + b_pad * k_pad * 4 + b_pad * h_pad * 2)

    pi_pad, h_act = pl.pallas_call(
        functools.partial(_h_pi_kernel, k_valid=k),
        out_shape=(jax.ShapeDtypeStruct((b_pad, k_pad), f32),
                   jax.ShapeDtypeStruct((b_pad, h_pad), compute_dtype)),
        grid_spec=pltpu.PrefetchScalarGridSpec(
            num_scalar_prefetch=0,
            grid=(b_pad // tm, n_gk),
            in_specs=[
                pl.BlockSpec((tm, tg), lambda i, g: (i, g)),         # x tile
                pl.BlockSpec((tg, h_pad), lambda i, g: (g, 0)),      # W1 (streamed)
                pl.BlockSpec((1, h_pad), lambda i, g: (0, 0)),       # BN scale
                pl.BlockSpec((1, h_pad), lambda i, g: (0, 0)),       # BN shift
                pl.BlockSpec((h_pad, k_pad), lambda i, g: (0, 0)),   # W21
                pl.BlockSpec((1, k_pad), lambda i, g: (0, 0)),       # b21
            ],
            out_specs=[
                pl.BlockSpec((tm, k_pad), lambda i, g: (i, 0)),      # pi
                pl.BlockSpec((tm, h_pad), lambda i, g: (i, 0)),      # h (bf16)
            ],
            scratch_shapes=[pltpu.VMEM((tm, h_pad), f32)],           # fc1 accumulator
        ),
        compiler_params=pltpu.CompilerParams(
            dimension_semantics=("parallel", "arbitrary"),
            vmem_limit_bytes=vmem1_limit),
        cost_estimate=pl.CostEstimate(flops=flops1,
                                      transcendentals=b_pad * k_pad,
                                      bytes_accessed=bytes1),
    )(x_p, w1_p, scale_p, shift_p, w21_p, b21_p)

    # ---------------- call 2: mu = h @ W22 + b22 ----------------
    vmem2 = (
        2 * tm * h_pad * 2         # h tiles (bf16)
        + 2 * h_pad * tn * 2       # streamed W22 tiles (bf16)
        + 2 * tn * 4               # b22 tiles
        + 2 * tm * tn * 4          # mu out (f32)
    )
    vmem2_limit = int(min(48 * _MIB, max(32 * _MIB, 2 * vmem2 + 2 * _MIB)))

    flops2 = 2 * b_pad * h_pad * genes_pad
    bytes2 = (b_pad * h_pad * 2 + w22_p.size * 2 + b22_p.size * 4
              + b_pad * genes_pad * 4)

    mu_pad = pl.pallas_call(
        _mu_kernel,
        out_shape=jax.ShapeDtypeStruct((b_pad, genes_pad), f32),
        grid_spec=pltpu.PrefetchScalarGridSpec(
            num_scalar_prefetch=0,
            # Gene-tile axis leads and is parallel -> both TCs get work on v7x
            # even when there is only one batch tile.
            grid=(n_gt, b_pad // tm),
            in_specs=[
                pl.BlockSpec((tm, h_pad), lambda j, i: (i, 0)),      # h (bf16)
                pl.BlockSpec((h_pad, tn), lambda j, i: (0, j)),      # W22 tile
                pl.BlockSpec((1, tn), lambda j, i: (0, j)),          # b22 tile
            ],
            out_specs=pl.BlockSpec((tm, tn), lambda j, i: (i, j)),   # mu tile
        ),
        compiler_params=pltpu.CompilerParams(
            dimension_semantics=("parallel", "parallel"),
            vmem_limit_bytes=vmem2_limit),
        cost_estimate=pl.CostEstimate(flops=flops2, transcendentals=0,
                                      bytes_accessed=bytes2),
    )(h_act, w22_p, b22_p)

    return pi_pad[:B, :k], mu_pad[:B, :genes]


# --------------------------------------------------------------------------
# One-time parameter preparation: BN fold, bf16 cast, lane-dense padding.
# --------------------------------------------------------------------------
def prepare_wencoder_params(w1_t, b1, gamma, beta, running_mean, running_var,
                            w21_t, b21, w22_t, b22, *, use_batch_norm=True,
                            eps=1e-5, compute_dtype=jnp.bfloat16):
    """Weights stored pre-transposed as (in_features, out_features):
    w1_t: (genes, hidden), w21_t: (hidden, k), w22_t: (hidden, genes)."""
    genes, hidden = w1_t.shape
    k = w21_t.shape[1]
    f32 = jnp.float32

    # Fold BatchNorm1d (inference, running stats) + fc1 bias into scale/shift.
    if use_batch_norm:
        scale = gamma.astype(f32) / jnp.sqrt(running_var.astype(f32) + eps)
        shift = (b1.astype(f32) - running_mean.astype(f32)) * scale + beta.astype(f32)
    else:
        scale = jnp.ones((hidden,), f32)
        shift = b1.astype(f32)

    h_pad = _round_up(hidden, 128)                 # 400 -> 512
    k_pad = _round_up(k, 128)

    # Gene tile size: lane-dense, used both as the fc1 K tile and the fc22
    # output tile; kept <= 2048 so streamed buffers stay small.
    g128 = _round_up(genes, 128)
    if g128 <= 2048:
        tg = g128
    elif genes >= 8192:
        tg = 2048
    else:
        tg = 1024
    genes_pad = _round_up(genes, tg)

    def pad2(a, r, c):
        return jnp.pad(a, ((0, r - a.shape[0]), (0, c - a.shape[1])))

    def pad1(a, c):
        return jnp.pad(a, (0, c - a.shape[0]))

    w1_p = pad2(w1_t.astype(compute_dtype), genes_pad, h_pad)
    w21_p = pad2(w21_t.astype(compute_dtype), h_pad, k_pad)
    w22_p = pad2(w22_t.astype(compute_dtype), h_pad, genes_pad)
    scale_p = pad1(scale, h_pad).reshape(1, h_pad)
    shift_p = pad1(shift, h_pad).reshape(1, h_pad)
    b21_p = pad1(b21.astype(f32), k_pad).reshape(1, k_pad)
    b22_p = pad1(b22.astype(f32), genes_pad).reshape(1, genes_pad)

    arrays = (w1_p, scale_p, shift_p, w21_p, b21_p, w22_p, b22_p)
    meta = dict(genes=genes, k=k, h_pad=h_pad, k_pad=k_pad,
                tg=tg, genes_pad=genes_pad)
    return arrays, meta


def make_wencoder_fn(params, *, use_batch_norm=True, eps=1e-5,
                     compute_dtype=jnp.bfloat16, tm_max=128, tn=None):
    """Prepare padded/cast params once and return a jitted forward fn of x."""
    arrays, meta = prepare_wencoder_params(
        *params, use_batch_norm=use_batch_norm, eps=eps,
        compute_dtype=compute_dtype)
    genes_pad = meta["genes_pad"]
    tg = meta["tg"]
    if tn is None:
        tn = tg

    fwd_padded = functools.partial(
        _wencoder_forward_padded,
        genes=meta["genes"], k=meta["k"], h_pad=meta["h_pad"],
        k_pad=meta["k_pad"], tg=tg, tn=tn, compute_dtype=compute_dtype)

    @functools.partial(jax.jit, static_argnames=("tm", "B"))
    def _run(x_p, *arrs, tm, B):
        return fwd_padded(x_p, *arrs, tm=tm, B=B)

    def fwd(x):
        B = x.shape[0]
        tm = min(tm_max, _round_up(B, 16))         # bf16: 16-row sublane packing
        b_pad = _round_up(B, tm)
        x_p = jnp.pad(x.astype(compute_dtype),
                      ((0, b_pad - B), (0, genes_pad - x.shape[1])))
        return _run(x_p, *arrays, tm=tm, B=B)

    return fwd


# --------------------------------------------------------------------------
# Parameter init (mirrors torch defaults) and pure-JAX reference.
# --------------------------------------------------------------------------
def init_params(key, genes, k, hidden=400, dtype=jnp.float32):
    """Linear ~ U[-1/sqrt(fan_in), 1/sqrt(fan_in)]; BN params randomized so the
    folded-BN path is actually exercised."""
    ks = jax.random.split(key, 10)
    bg = 1.0 / (genes ** 0.5)
    bh = 1.0 / (hidden ** 0.5)
    w1_t = jax.random.uniform(ks[0], (genes, hidden), dtype, -bg, bg)
    b1 = jax.random.uniform(ks[1], (hidden,), dtype, -bg, bg)
    gamma = jax.random.uniform(ks[2], (hidden,), dtype, 0.5, 1.5)
    beta = 0.1 * jax.random.normal(ks[3], (hidden,), dtype)
    running_mean = 0.1 * jax.random.normal(ks[4], (hidden,), dtype)
    running_var = jax.random.uniform(ks[5], (hidden,), dtype, 0.5, 1.5)
    w21_t = jax.random.uniform(ks[6], (hidden, k), dtype, -bh, bh)
    b21 = jax.random.uniform(ks[7], (k,), dtype, -bh, bh)
    w22_t = jax.random.uniform(ks[8], (hidden, genes), dtype, -bh, bh)
    b22 = jax.random.uniform(ks[9], (genes,), dtype, -bh, bh)
    return (w1_t, b1, gamma, beta, running_mean, running_var, w21_t, b21, w22_t, b22)


def wencoder_reference(x, w1_t, b1, gamma, beta, running_mean, running_var,
                       w21_t, b21, w22_t, b22, *, use_batch_norm=True,
                       eps=1e-5, compute_dtype=jnp.bfloat16):
    """Pure-JAX reference using the same bf16-valued operands as the kernel."""
    f32 = jnp.float32
    cast = lambda a: a.astype(compute_dtype).astype(f32)
    h = cast(x) @ cast(w1_t) + b1
    if use_batch_norm:
        h = (h - running_mean) / jnp.sqrt(running_var + eps) * gamma + beta
    h = jnp.maximum(h, 0.0)
    hc = cast(h)
    logits = hc @ cast(w21_t) + b21
    pi = jax.nn.softmax(logits, axis=-1)
    mu = hc @ cast(w22_t) + b22
    return pi, mu


if __name__ == "__main__":
    key = jax.random.PRNGKey(0)
    genes, k, hidden, batch = 200, 10, 400, 8

    kp, kx = jax.random.split(key)
    params = init_params(kp, genes, k, hidden)
    x = jax.random.normal(kx, (batch, genes), jnp.float32)

    fwd = make_wencoder_fn(params)
    pi, mu = fwd(x)
    pi, mu = jax.block_until_ready((pi, mu))

    pi_ref, mu_ref = wencoder_reference(x, *params)
    assert pi.shape == (batch, k) and mu.shape == (batch, genes)
    assert jnp.allclose(jnp.sum(pi, axis=-1), 1.0, atol=1e-4)
    assert jnp.allclose(pi, pi_ref, atol=5e-3, rtol=5e-3)
    assert jnp.allclose(mu, mu_ref, atol=5e-3, rtol=5e-3)

    print("KERNEL_OK")
</pallas_src>

<mosaic_0001>
module attributes {stable_mosaic.version = 11 : i64} {
  func.func @_h_pi_kernel(%arg0: i32, %arg1: i32, %arg2: memref<16x256xbf16, #tpu.memory_space<vmem>>, %arg3: memref<256x512xbf16, #tpu.memory_space<vmem>>, %arg4: memref<1x512xf32, #tpu.memory_space<vmem>>, %arg5: memref<1x512xf32, #tpu.memory_space<vmem>>, %arg6: memref<512x128xbf16, #tpu.memory_space<vmem>>, %arg7: memref<1x128xf32, #tpu.memory_space<vmem>>, %arg8: memref<16x128xf32, #tpu.memory_space<vmem>>, %arg9: memref<16x512xbf16, #tpu.memory_space<vmem>>, %arg10: memref<16x512xf32, #tpu.memory_space<vmem>>) attributes {dimension_semantics = [#tpu.dimension_semantics<parallel>, #tpu.dimension_semantics<arbitrary>], iteration_bounds = array<i64: 1, 1>, scalar_prefetch = 0 : i64, scratch_operands = 1 : i64, tpu.core_type = #tpu.core_type<tc>, window_params = [{transform_indices = @transform_0, window_bounds = array<i64: 16, 256>}, {transform_indices = @transform_1, window_bounds = array<i64: 256, 512>}, {pipeline_mode = #tpu.pipeline_mode<synchronous>, transform_indices = @transform_2, window_bounds = array<i64: 1, 512>}, {pipeline_mode = #tpu.pipeline_mode<synchronous>, transform_indices = @transform_3, window_bounds = array<i64: 1, 512>}, {pipeline_mode = #tpu.pipeline_mode<synchronous>, transform_indices = @transform_4, window_bounds = array<i64: 512, 128>}, {pipeline_mode = #tpu.pipeline_mode<synchronous>, transform_indices = @transform_5, window_bounds = array<i64: 1, 128>}, {transform_indices = @transform_6, window_bounds = array<i64: 16, 128>}, {transform_indices = @transform_7, window_bounds = array<i64: 16, 512>}]} {
    %c0_i32 = arith.constant 0 : i32
    %0 = arith.cmpi eq, %arg1, %c0_i32 : i32
    %1 = arith.extui %0 : i1 to i32
    %c0_i32_0 = arith.constant 0 : i32
    %2 = arith.cmpi ne, %1, %c0_i32_0 : i32
    scf.if %2 {
      %cst_10 = arith.constant 0.000000e+00 : f32
      %12 = vector.broadcast %cst_10 : f32 to vector<16x512xf32>
      %c0_11 = arith.constant 0 : index
      %c0_12 = arith.constant 0 : index
      %13 = vector.load %arg10[%c0_11, %c0_12] : memref<16x512xf32, #tpu.memory_space<vmem>>, vector<16x512xf32>
      tpu.vector_store %arg10[%c0_11, %c0_12], %12 {strides = array<i32>} : memref<16x512xf32, #tpu.memory_space<vmem>>, vector<16x512xf32>,
    } else {
    }
    %c0 = arith.constant 0 : index
    %c0_1 = arith.constant 0 : index
    %3 = vector.load %arg10[%c0, %c0_1] : memref<16x512xf32, #tpu.memory_space<vmem>>, vector<16x512xf32>
    %c0_2 = arith.constant 0 : index
    %c0_3 = arith.constant 0 : index
    %4 = vector.load %arg2[%c0_2, %c0_3] : memref<16x256xbf16, #tpu.memory_space<vmem>>, vector<16x256xbf16>
    %c0_4 = arith.constant 0 : index
    %c0_5 = arith.constant 0 : index
    %5 = vector.load %arg3[%c0_4, %c0_5] : memref<256x512xbf16, #tpu.memory_space<vmem>>, vector<256x512xbf16>
    %cst = arith.constant dense<0.000000e+00> : vector<16x512xf32>
    %6 = tpu.matmul %4, %5, %cst {dimension_numbers = #tpu.dot_dimension_numbers<[1], [0], [0], [1], [0, 0, 1, 1], [], []>} : vector<16x256xbf16>, vector<256x512xbf16>, vector<16x512xf32> -> vector<16x512xf32>
    %7 = arith.addf %3, %6 : vector<16x512xf32>
    %c0_6 = arith.constant 0 : index
    %c0_7 = arith.constant 0 : index
    %8 = vector.load %arg10[%c0_6, %c0_7] : memref<16x512xf32, #tpu.memory_space<vmem>>, vector<16x512xf32>
    tpu.vector_store %arg10[%c0_6, %c0_7], %7 {strides = array<i32>} : memref<16x512xf32, #tpu.memory_space<vmem>>, vector<16x512xf32>,
    %c0_i32_8 = arith.constant 0 : i32
    %9 = arith.cmpi eq, %arg1, %c0_i32_8 : i32
    %10 = arith.extui %9 : i1 to i32
    %c0_i32_9 = arith.constant 0 : i32
    %11 = arith.cmpi ne, %10, %c0_i32_9 : i32
    scf.if %11 {
      %c0_10 = arith.constant 0 : index
      %c0_11 = arith.constant 0 : index
      %12 = vector.load %arg10[%c0_10, %c0_11] : memref<16x512xf32, #tpu.memory_space<vmem>>, vector<16x512xf32>
      %c0_12 = arith.constant 0 : index
      %c0_13 = arith.constant 0 : index
      %13 = vector.load %arg4[%c0_12, %c0_13] : memref<1x512xf32, #tpu.memory_space<vmem>>, vector<1x512xf32>
      %14 = vector.broadcast %13 : vector<1x512xf32> to vector<16x512xf32>
      %15 = arith.mulf %12, %14 : vector<16x512xf32>
      %c0_14 = arith.constant 0 : index
      %c0_15 = arith.constant 0 : index
      %16 = vector.load %arg5[%c0_14, %c0_15] : memref<1x512xf32, #tpu.memory_space<vmem>>, vector<1x512xf32>
      %17 = vector.broadcast %16 : vector<1x512xf32> to vector<16x512xf32>
      %18 = arith.addf %15, %17 : vector<16x512xf32>
      %cst_16 = arith.constant 0.000000e+00 : f32
      %19 = vector.broadcast %cst_16 : f32 to vector<16x512xf32>
      %20 = arith.maximumf %18, %19 : vector<16x512xf32>
      %21 = arith.truncf %20 : vector<16x512xf32> to vector<16x512xbf16>
      %c0_17 = arith.constant 0 : index
      %c0_18 = arith.constant 0 : index
      %22 = vector.load %arg9[%c0_17, %c0_18] : memref<16x512xbf16, #tpu.memory_space<vmem>>, vector<16x512xbf16>
      tpu.vector_store %arg9[%c0_17, %c0_18], %21 {strides = array<i32>} : memref<16x512xbf16, #tpu.memory_space<vmem>>, vector<16x512xbf16>,
      %c0_19 = arith.constant 0 : index
      %c0_20 = arith.constant 0 : index
      %23 = vector.load %arg6[%c0_19, %c0_20] : memref<512x128xbf16, #tpu.memory_space<vmem>>, vector<512x128xbf16>
      %cst_21 = arith.constant dense<0.000000e+00> : vector<16x128xf32>
      %24 = tpu.matmul %21, %23, %cst_21 {dimension_numbers = #tpu.dot_dimension_numbers<[1], [0], [0], [1], [0, 0, 1, 1], [], []>} : vector<16x512xbf16>, vector<512x128xbf16>, vector<16x128xf32> -> vector<16x128xf32>
      %c0_22 = arith.constant 0 : index
      %c0_23 = arith.constant 0 : index
      %25 = vector.load %arg7[%c0_22, %c0_23] : memref<1x128xf32, #tpu.memory_space<vmem>>, vector<1x128xf32>
      %26 = vector.broadcast %25 : vector<1x128xf32> to vector<16x128xf32>
      %27 = arith.addf %24, %26 : vector<16x128xf32>
      %28 = tpu.iota {dimensions = array<i32: 1>} : vector<16x128xi32>
      %c10_i32 = arith.constant 10 : i32
      %29 = vector.broadcast %c10_i32 : i32 to vector<16x128xi32>
      %30 = arith.cmpi slt, %28, %29 : vector<16x128xi32>
      %cst_24 = arith.constant -1.000000e+30 : f32
      %31 = vector.broadcast %cst_24 : f32 to vector<16x128xf32>
      %32 = arith.select %30, %27, %31 : vector<16x128xi1>, vector<16x128xf32>
      %cst_25 = arith.constant dense<0xFF800000> : vector<16xf32>
      %33 = vector.multi_reduction <maximumf>, %32, %cst_25 [1] : vector<16x128xf32> to vector<16xf32>
      %34 = vector.shape_cast %33 : vector<16xf32> to vector<16x1xf32>
      %35 = vector.broadcast %34 : vector<16x1xf32> to vector<16x128xf32>
      %36 = arith.subf %32, %35 : vector<16x128xf32>
      %37 = math.exp %36 : vector<16x128xf32>
      %cst_26 = arith.constant dense<0.000000e+00> : vector<16xf32>
      %38 = vector.multi_reduction <add>, %37, %cst_26 [1] : vector<16x128xf32> to vector<16xf32>
      %39 = vector.shape_cast %38 : vector<16xf32> to vector<16x1xf32>
      %40 = vector.broadcast %39 : vector<16x1xf32> to vector<16x128xf32>
      %41 = arith.divf %37, %40 : vector<16x128xf32>
      %c0_27 = arith.constant 0 : index
      %c0_28 = arith.constant 0 : index
      %42 = vector.load %arg8[%c0_27, %c0_28] : memref<16x128xf32, #tpu.memory_space<vmem>>, vector<16x128xf32>
      tpu.vector_store %arg8[%c0_27, %c0_28], %41 {strides = array<i32>} : memref<16x128xf32, #tpu.memory_space<vmem>>, vector<16x128xf32>,
    } else {
    }
    return
  }
  func.func @transform_0(%arg0: i32, %arg1: i32) -> (i32, i32) {
    %c0_i32 = arith.constant 0 : i32
    return %arg0, %arg1 : i32, i32
  }
  func.func @transform_1(%arg0: i32, %arg1: i32) -> (i32, i32) {
    %c0_i32 = arith.constant 0 : i32
    %c0_i32_0 = arith.constant 0 : i32
    return %arg1, %c0_i32 : i32, i32
  }
  func.func @transform_2(%arg0: i32, %arg1: i32) -> (i32, i32) {
    %c0_i32 = arith.constant 0 : i32
    %c0_i32_0 = arith.constant 0 : i32
    %c0_i32_1 = arith.constant 0 : i32
    return %c0_i32, %c0_i32_0 : i32, i32
  }
  func.func @transform_3(%arg0: i32, %arg1: i32) -> (i32, i32) {
    %c0_i32 = arith.constant 0 : i32
    %c0_i32_0 = arith.constant 0 : i32
    %c0_i32_1 = arith.constant 0 : i32
    return %c0_i32, %c0_i32_0 : i32, i32
  }
  func.func @transform_4(%arg0: i32, %arg1: i32) -> (i32, i32) {
    %c0_i32 = arith.constant 0 : i32
    %c0_i32_0 = arith.constant 0 : i32
    %c0_i32_1 = arith.constant 0 : i32
    return %c0_i32, %c0_i32_0 : i32, i32
  }
  func.func @transform_5(%arg0: i32, %arg1: i32) -> (i32, i32) {
    %c0_i32 = arith.constant 0 : i32
    %c0_i32_0 = arith.constant 0 : i32
    %c0_i32_1 = arith.constant 0 : i32
    return %c0_i32, %c0_i32_0 : i32, i32
  }
  func.func @transform_6(%arg0: i32, %arg1: i32) -> (i32, i32) {
    %c0_i32 = arith.constant 0 : i32
    %c0_i32_0 = arith.constant 0 : i32
    return %arg0, %c0_i32 : i32, i32
  }
  func.func @transform_7(%arg0: i32, %arg1: i32) -> (i32, i32) {
    %c0_i32 = arith.constant 0 : i32
    %c0_i32_0 = arith.constant 0 : i32
    return %arg0, %c0_i32 : i32, i32
  }
}

module attributes {stable_mosaic.version = 11 : i64} {
  func.func @_mu_kernel(%arg0: i32, %arg1: i32, %arg2: memref<16x512xbf16, #tpu.memory_space<vmem>>, %arg3: memref<512x256xbf16, #tpu.memory_space<vmem>>, %arg4: memref<1x256xf32, #tpu.memory_space<vmem>>, %arg5: memref<16x256xf32, #tpu.memory_space<vmem>>) attributes {dimension_semantics = [#tpu.dimension_semantics<parallel>, #tpu.dimension_semantics<parallel>], iteration_bounds = array<i64: 1, 1>, scalar_prefetch = 0 : i64, scratch_operands = 0 : i64, tpu.core_type = #tpu.core_type<tc>, window_params = [{transform_indices = @transform_0, window_bounds = array<i64: 16, 512>}, {transform_indices = @transform_1, window_bounds = array<i64: 512, 256>}, {transform_indices = @transform_2, window_bounds = array<i64: 1, 256>}, {transform_indices = @transform_3, window_bounds = array<i64: 16, 256>}]} {
    %c0 = arith.constant 0 : index
    %c0_0 = arith.constant 0 : index
    %0 = vector.load %arg2[%c0, %c0_0] : memref<16x512xbf16, #tpu.memory_space<vmem>>, vector<16x512xbf16>
    %c0_1 = arith.constant 0 : index
    %c0_2 = arith.constant 0 : index
    %1 = vector.load %arg3[%c0_1, %c0_2] : memref<512x256xbf16, #tpu.memory_space<vmem>>, vector<512x256xbf16>
    %cst = arith.constant dense<0.000000e+00> : vector<16x256xf32>
    %2 = tpu.matmul %0, %1, %cst {dimension_numbers = #tpu.dot_dimension_numbers<[1], [0], [0], [1], [0, 0, 1, 1], [], []>} : vector<16x512xbf16>, vector<512x256xbf16>, vector<16x256xf32> -> vector<16x256xf32>
    %c0_3 = arith.constant 0 : index
    %c0_4 = arith.constant 0 : index
    %3 = vector.load %arg4[%c0_3, %c0_4] : memref<1x256xf32, #tpu.memory_space<vmem>>, vector<1x256xf32>
    %4 = vector.broadcast %3 : vector<1x256xf32> to vector<16x256xf32>
    %5 = arith.addf %2, %4 : vector<16x256xf32>
    %c0_5 = arith.constant 0 : index
    %c0_6 = arith.constant 0 : index
    %6 = vector.load %arg5[%c0_5, %c0_6] : memref<16x256xf32, #tpu.memory_space<vmem>>, vector<16x256xf32>
    tpu.vector_store %arg5[%c0_5, %c0_6], %5 {strides = array<i32>} : memref<16x256xf32, #tpu.memory_space<vmem>>, vector<16x256xf32>,
    return
  }
  func.func @transform_0(%arg0: i32, %arg1: i32) -> (i32, i32) {
    %c0_i32 = arith.constant 0 : i32
    %c0_i32_0 = arith.constant 0 : i32
    return %arg1, %c0_i32 : i32, i32
  }
  func.func @transform_1(%arg0: i32, %arg1: i32) -> (i32, i32) {
    %c0_i32 = arith.constant 0 : i32
    %c0_i32_0 = arith.constant 0 : i32
    return %c0_i32, %arg0 : i32, i32
  }
  func.func @transform_2(%arg0: i32, %arg1: i32) -> (i32, i32) {
    %c0_i32 = arith.constant 0 : i32
    %c0_i32_0 = arith.constant 0 : i32
    return %c0_i32, %arg0 : i32, i32
  }
  func.func @transform_3(%arg0: i32, %arg1: i32) -> (i32, i32) {
    %c0_i32 = arith.constant 0 : i32
    return %arg1, %arg0 : i32, i32
  }
}

</mosaic_0001>

<bundles_post_ra>
// kernel: _run.3
= control target key start
LH: loop header
LB: loop body
LE: loop exit
PB: predicated region body
PF: predicated region fallthrough
CT: control target
= control target key end

     0   :  { %s937_s1 = inlined_call_operand.vmem [shape: bf16[512,256], index: 1, kind: input, shape index: {}]   ;;  %s938_s0 = inlined_call_operand.vmem [shape: bf16[16,512], index: 0, kind: input, shape index: {}]   ;;  %s939_s2 = inlined_call_operand.vmem [shape: f32[1,256], index: 2, kind: input, shape index: {}]   ;;  %s940_s3 = inlined_call_operand.vmem [shape: f32[16,256], index: 3, kind: output, shape index: {}]  }
   0x1   :  { %v596_v0 = vld [vmem:[%s937_s1 + $0x74] ss:$8 sps:$4 sm:$0xff]   ;;  %v600_v2 = vld [vmem:[%s937_s1 + $0x70] ss:$8 sps:$4 sm:$0xff]   ;;  %v602_v4 = vld [vmem:[%s937_s1 + $0x64] ss:$8 sps:$4 sm:$0xff]  }
   0x2   :  { %v598_v1 = vld [vmem:[%s937_s1 + $0x174] ss:$8 sps:$4 sm:$0xff]   ;;  %434 = vmatprep.subr.bf16.mxu0 %v596_v0  ;;  %v601_v3 = vld [vmem:[%s937_s1 + $0x170] ss:$8 sps:$4 sm:$0xff]   ;;  %v604_v5 = vld [vmem:[%s937_s1 + $0x164] ss:$8 sps:$4 sm:$0xff]  }
   0x3   :  { %477 = vmatprep.subr.bf16.mxu1 %v598_v1  ;;  %435 = vmatpush1.bf16.msra.mxu0 %v600_v2  ;;  %v606_v6 = vld [vmem:[%s937_s1 + $0x60] ss:$8 sps:$4 sm:$0xff]   ;;  %v608_v8 = vld [vmem:[%s937_s1 + $0x54] ss:$8 sps:$4 sm:$0xff]   ;;  %v612_v10 = vld [vmem:[%s937_s1 + $0x50] ss:$8 sps:$4 sm:$0xff]  }
   0x4   :  { %478 = vmatpush1.bf16.msra.mxu1 %v601_v3  ;;  %436 = vmatprep.subr.bf16.mxu0 %v602_v4  ;;  %v607_v7 = vld [vmem:[%s937_s1 + $0x160] ss:$8 sps:$4 sm:$0xff]   ;;  %v610_v9 = vld [vmem:[%s937_s1 + $0x154] ss:$8 sps:$4 sm:$0xff]   ;;  %v613_v11 = vld [vmem:[%s937_s1 + $0x150] ss:$8 sps:$4 sm:$0xff]   ;;  %v84_v4 = vlaneseq }
   0x5   :  { %479 = vmatprep.subr.bf16.mxu1 %v604_v5  ;;  %v614_v12 = vld [vmem:[%s937_s1 + $0x44] ss:$8 sps:$4 sm:$0xff]   ;;  %v618_v14 = vld [vmem:[%s937_s1 + $0x40] ss:$8 sps:$4 sm:$0xff]   ;;  %v620_v16 = vld [vmem:[%s937_s1 + $0x34] ss:$8 sps:$4 sm:$0xff]  }
   0x6   :  { %v616_v13 = vld [vmem:[%s937_s1 + $0x144] ss:$8 sps:$4 sm:$0xff]   ;;  %v619_v15 = vld [vmem:[%s937_s1 + $0x140] ss:$8 sps:$4 sm:$0xff]   ;;  %v622_v17 = vld [vmem:[%s937_s1 + $0x134] ss:$8 sps:$4 sm:$0xff]  }
   0x7   :  { %437 = vmatpush1.bf16.msra.mxu0 %v606_v6  ;;  %v624_v18 = vld [vmem:[%s937_s1 + $0x30] ss:$8 sps:$4 sm:$0xff]   ;;  %v626_v20 = vld [vmem:[%s937_s1 + $0x24] ss:$8 sps:$4 sm:$0xff]   ;;  %v630_v22 = vld [vmem:[%s937_s1 + $0x20] ss:$8 sps:$4 sm:$0xff]  }
   0x8   :  { %480 = vmatpush1.bf16.msra.mxu1 %v607_v7  ;;  %438 = vmatprep.subr.bf16.mxu0 %v608_v8  ;;  %v625_v19 = vld [vmem:[%s937_s1 + $0x130] ss:$8 sps:$4 sm:$0xff]   ;;  %v628_v21 = vld [vmem:[%s937_s1 + $0x124] ss:$8 sps:$4 sm:$0xff]   ;;  %v631_v23 = vld [vmem:[%s937_s1 + $0x120] ss:$8 sps:$4 sm:$0xff]  }
   0x9   :  { %481 = vmatprep.subr.bf16.mxu1 %v610_v9  ;;  %v632_v24 = vld [vmem:[%s937_s1 + $0x14] ss:$8 sps:$4 sm:$0xff]   ;;  %v636_v26 = vld [vmem:[%s937_s1 + $0x10] ss:$8 sps:$4 sm:$0xff]   ;;  %v638_v28 = vld [vmem:[%s937_s1 + $0x4] ss:$8 sps:$4 sm:$0xff]  }
   0xa   :  { %v634_v25 = vld [vmem:[%s937_s1 + $0x114] ss:$8 sps:$4 sm:$0xff]   ;;  %v637_v27 = vld [vmem:[%s937_s1 + $0x110] ss:$8 sps:$4 sm:$0xff]   ;;  %v640_v29 = vld [vmem:[%s937_s1 + $0x104] ss:$8 sps:$4 sm:$0xff]  }
   0xb   :  { %439 = vmatpush1.bf16.msra.mxu0 %v612_v10  ;;  %v642_v30 = vld [vmem:[%s937_s1] ss:$8 sps:$4 sm:$0xff]   ;;  %v644_v32 = vld [vmem:[%s937_s1 + $0xf4] ss:$8 sps:$4 sm:$0xff]   ;;  %v648_v34 = vld [vmem:[%s937_s1 + $0xf0] ss:$8 sps:$4 sm:$0xff]  }
   0xc   :  { %482 = vmatpush1.bf16.msra.mxu1 %v613_v11  ;;  %440 = vmatprep.subr.bf16.mxu0 %v614_v12  ;;  %v643_v31 = vld [vmem:[%s937_s1 + $0x100] ss:$8 sps:$4 sm:$0xff]   ;;  %v646_v33 = vld [vmem:[%s937_s1 + $0x1f4] ss:$8 sps:$4 sm:$0xff]   ;;  %v649_v35 = vld [vmem:[%s937_s1 + $0x1f0] ss:$8 sps:$4 sm:$0xff]  }
   0xd   :  { %483 = vmatprep.subr.bf16.mxu1 %v616_v13  ;;  %v650_v36 = vld [vmem:[%s937_s1 + $0xe4] ss:$8 sps:$4 sm:$0xff]   ;;  %v654_v38 = vld [vmem:[%s937_s1 + $0xe0] ss:$8 sps:$4 sm:$0xff]   ;;  %v656_v40 = vld [vmem:[%s937_s1 + $0xd4] ss:$8 sps:$4 sm:$0xff]  }
   0xe   :  { %v652_v37 = vld [vmem:[%s937_s1 + $0x1e4] ss:$8 sps:$4 sm:$0xff]   ;;  %v655_v39 = vld [vmem:[%s937_s1 + $0x1e0] ss:$8 sps:$4 sm:$0xff]   ;;  %v658_v41 = vld [vmem:[%s937_s1 + $0x1d4] ss:$8 sps:$4 sm:$0xff]  }
   0xf   :  { %441 = vmatpush1.bf16.msra.mxu0 %v618_v14  ;;  %v660_v42 = vld [vmem:[%s937_s1 + $0xd0] ss:$8 sps:$4 sm:$0xff]   ;;  %v662_v44 = vld [vmem:[%s937_s1 + $0xc4] ss:$8 sps:$4 sm:$0xff]   ;;  %v666_v46 = vld [vmem:[%s937_s1 + $0xc0] ss:$8 sps:$4 sm:$0xff]  }
  0x10   :  { %484 = vmatpush1.bf16.msra.mxu1 %v619_v15  ;;  %442 = vmatprep.subr.bf16.mxu0 %v620_v16  ;;  %v661_v43 = vld [vmem:[%s937_s1 + $0x1d0] ss:$8 sps:$4 sm:$0xff]   ;;  %v664_v45 = vld [vmem:[%s937_s1 + $0x1c4] ss:$8 sps:$4 sm:$0xff]   ;;  %v667_v48 = vld [vmem:[%s937_s1 + $0x1c0] ss:$8 sps:$4 sm:$0xff]  }
  0x11   :  { %485 = vmatprep.subr.bf16.mxu1 %v622_v17  ;;  %v694_v47 = vld [vmem:[%s938_s0 + $0x4] ss:$16 sps:$4 sm:$0xff]   ;;  %v697_v51 = vld [vmem:[%s938_s0 + $0xc] ss:$16 sps:$4 sm:$0xff]   ;;  %v672_v52 = vld [vmem:[%s937_s1 + $0xb0] ss:$8 sps:$4 sm:$0xff]  }
  0x12   :  { %v668_v49 = vld [vmem:[%s937_s1 + $0xb4] ss:$8 sps:$4 sm:$0xff]   ;;  %466 = vmatprep.mubr.bf16.mxu0 %v694_v47  ;;  %509 = vmatprep.mubr.bf16.mxu1 %v697_v51  ;;  %v673_v53 = vld [vmem:[%s937_s1 + $0x1b0] ss:$8 sps:$4 sm:$0xff]   ;;  %v674_v54 = vld [vmem:[%s937_s1 + $0xa4] ss:$8 sps:$4 sm:$0xff]  }
  0x13   :  { %443 = vmatpush1.bf16.msra.mxu0 %v624_v18  ;;  %v670_v50 = vld [vmem:[%s937_s1 + $0x1b4] ss:$8 sps:$4 sm:$0xff]   ;;  %v676_v55 = vld [vmem:[%s937_s1 + $0x1a4] ss:$8 sps:$4 sm:$0xff]   ;;  %v678_v56 = vld [vmem:[%s937_s1 + $0xa0] ss:$8 sps:$4 sm:$0xff]  }
  0x14   :  { %486 = vmatpush1.bf16.msra.mxu1 %v625_v19  ;;  %444 = vmatprep.subr.bf16.mxu0 %v626_v20  ;;  %v679_v57 = vld [vmem:[%s937_s1 + $0x1a0] ss:$8 sps:$4 sm:$0xff]   ;;  %v680_v58 = vld [vmem:[%s937_s1 + $0x94] ss:$8 sps:$4 sm:$0xff]   ;;  %v684_v60 = vld [vmem:[%s937_s1 + $0x90] ss:$8 sps:$4 sm:$0xff]  }
  0x15   :  { %487 = vmatprep.subr.bf16.mxu1 %v628_v21  ;;  %v682_v59 = vld [vmem:[%s937_s1 + $0x194] ss:$8 sps:$4 sm:$0xff]   ;;  %v685_v61 = vld [vmem:[%s937_s1 + $0x190] ss:$8 sps:$4 sm:$0xff]   ;;  %v686_v62 = vld [vmem:[%s937_s1 + $0x84] ss:$8 sps:$4 sm:$0xff]  }
  0x16   :  { %v688_v63 = vld [vmem:[%s937_s1 + $0x184] ss:$8 sps:$4 sm:$0xff]   ;;  %v690_v0 = vld [vmem:[%s937_s1 + $0x80] ss:$8 sps:$4 sm:$0xff]   ;;  %v85_v5 = vshrl.u32 %v84_v4, 7 }
  0x17   :  { %445 = vmatpush1.bf16.msra.mxu0 %v630_v22  ;;  %v691_v1 = vld [vmem:[%s937_s1 + $0x180] ss:$8 sps:$4 sm:$0xff]  }
  0x18   :  { %488 = vmatpush1.bf16.msra.mxu1 %v631_v23  ;;  %446 = vmatprep.subr.bf16.mxu0 %v632_v24  ;;  %v692_v2 = vld [vmem:[%s938_s0] ss:$16 sps:$4 sm:$0xff]   ;;  %v695_v3 = vld [vmem:[%s938_s0 + $0x8] ss:$16 sps:$4 sm:$0xff]   ;;  %v86_v6 = vsub.s32 0, %v85_v5  ;;  %v90_v8 = vsub.s32 1, %v85_v5 }
  0x19   :  { %489 = vmatprep.subr.bf16.mxu1 %v634_v25  ;;  %v82_v7 = vld [vmem:[%s939_s2] sm:$0x3] }
  0x1a   :  { %v87_v9 = vrot.slane %v82_v7, %v86_v6  ;;  %v91_v10 = vrot.slane %v82_v7, %v90_v8 }
  0x1b   :  { %447 = vmatpush1.bf16.msra.mxu0 %v636_v26 }
  0x1c   :  { %490 = vmatpush1.bf16.msra.mxu1 %v637_v27  ;;  %448 = vmatprep.subr.bf16.mxu0 %v638_v28 }
  0x1d   :  { %491 = vmatprep.subr.bf16.mxu1 %v640_v29 }
  0x1f   :  { %449 = vmatpush1.bf16.msra.mxu0 %v642_v30 }
  0x20   :  { %492 = vmatpush1.bf16.msra.mxu1 %v643_v31  ;;  %450 = vmatprep.subr.bf16.mxu0 %v644_v32 }
  0x21   :  { %493 = vmatprep.subr.bf16.mxu1 %v646_v33 }
  0x23   :  { %451 = vmatpush2.bf16.msra.mxu0 %v648_v34 }
  0x24   :  { %494 = vmatpush2.bf16.msra.mxu1 %v649_v35  ;;  %452 = vmatprep.subr.bf16.mxu0 %v650_v36 }
  0x25   :  { %495 = vmatprep.subr.bf16.mxu1 %v652_v37 }
  0x27   :  { %453 = vmatpush2.bf16.msra.mxu0 %v654_v38 }
  0x28   :  { %496 = vmatpush2.bf16.msra.mxu1 %v655_v39  ;;  %454 = vmatprep.subr.bf16.mxu0 %v656_v40 }
  0x29   :  { %497 = vmatprep.subr.bf16.mxu1 %v658_v41 }
  0x2b   :  { %455 = vmatpush2.bf16.msra.mxu0 %v660_v42 }
  0x2c   :  { %498 = vmatpush2.bf16.msra.mxu1 %v661_v43  ;;  %456 = vmatprep.subr.bf16.mxu0 %v662_v44 }
  0x2d   :  { %499 = vmatprep.subr.bf16.mxu1 %v664_v45 }
  0x2f   :  { %457 = vmatpush2.bf16.msra.mxu0 %v666_v46 }
  0x30   :  { %500 = vmatpush2.bf16.msra.mxu1 %v667_v48  ;;  %458 = vmatprep.subr.bf16.mxu0 %v668_v49 }
  0x31   :  { %501 = vmatprep.subr.bf16.mxu1 %v670_v50 }
  0x33   :  { %459 = vmatpush2.bf16.msra.mxu0 %v672_v52 }
  0x34   :  { %502 = vmatpush2.bf16.msra.mxu1 %v673_v53  ;;  %460 = vmatprep.subr.bf16.mxu0 %v674_v54 }
  0x35   :  { %503 = vmatprep.subr.bf16.mxu1 %v676_v55 }
  0x37   :  { %461 = vmatpush2.bf16.msra.mxu0 %v678_v56 }
  0x38   :  { %504 = vmatpush2.bf16.msra.mxu1 %v679_v57  ;;  %462 = vmatprep.subr.bf16.mxu0 %v680_v58 }
  0x39   :  { %505 = vmatprep.subr.bf16.mxu1 %v682_v59 }
  0x3b   :  { %463 = vmatpush2.bf16.msra.mxu0 %v684_v60 }
  0x3c   :  { %506 = vmatpush2.bf16.msra.mxu1 %v685_v61  ;;  %464 = vmatprep.subr.bf16.mxu0 %v686_v62 }
  0x3d   :  { %507 = vmatprep.subr.bf16.mxu1 %v688_v63 }
  0x3f   :  { %465 = vmatpush2.bf16.msra.mxu0 %v690_v0 }
  0x40   :  { %508 = vmatpush2.bf16.msra.mxu1 %v691_v1 }
  0x42   :  { %467 = vmatmul.mubr.bf16.vlgmr.msra.gmra.mxu0 %v692_v2 }
  0x43   :  { %510 = vmatmul.mubr.bf16.vlgmr.msra.gmra.mxu1 %v695_v3 }
 0x102   :  { %v468_v11 = vpop.f32.mrf.mxu0 }
 0x103   :  { %v511_v12 = vpop.f32.mrf.mxu1  ;;  %v469_v13 = vadd.f32 %v468_v11, %v87_v9 }
 0x104   :  { %v470_v14 = vpop.f32.mrf.mxu0 }
 0x105   :  { %v513_v15 = vpop.f32.mrf.mxu1  ;;  %v512_v16 = vadd.f32 %v511_v12, %v469_v13  ;;  %v471_v17 = vadd.f32 %v470_v14, %v91_v10 }
 0x106   :  { %v472_v18 = vpop.f32.mrf.mxu0 }
 0x107   :  { %v515_v19 = vpop.f32.mrf.mxu1  ;;  %520 = vst [vmem:[%s940_s3] sm:$0xff] %v512_v16  ;;  %v514_v20 = vadd.f32 %v513_v15, %v471_v17  ;;  %v473_v21 = vadd.f32 %v472_v18, %v87_v9 }
 0x108   :  { %v474_v22 = vpop.f32.mrf.mxu0 }
 0x109   :  { %521 = vst [vmem:[%s940_s3 + $0x8] sm:$0xff] %v514_v20  ;;  %v516_v23 = vadd.f32 %v515_v19, %v473_v21  ;;  %v475_v24 = vadd.f32 %v474_v22, %v91_v10  ;;  %v517_v25 = vpop.f32.mrf.mxu1 }
 0x10b   :  { %522 = vst [vmem:[%s940_s3 + $0x10] sm:$0xff] %v516_v23  ;;  %v518_v26 = vadd.f32 %v517_v25, %v475_v24 }
 0x10d   :  { %523 = vst [vmem:[%s940_s3 + $0x18] sm:$0xff] %v518_v26 }

// kernel: _run.2
= control target key start
LH: loop header
LB: loop body
LE: loop exit
PB: predicated region body
PF: predicated region fallthrough
CT: control target
= control target key end

     0   :  { %13 = vsyncpa [#allocation4], 0  ;;  %s1629_s0 = inlined_call_operand.hbm [shape: bf16[16,256], index: 0, kind: input, shape index: {}]   ;;  %s1630_s1 = inlined_call_operand.hbm [shape: bf16[256,512], index: 1, kind: input, shape index: {}]   ;;  %s1631_s2 = inlined_call_operand.hbm [shape: f32[1,512], index: 2, kind: input, shape index: {}]   ;;  %s1632_s3 = inlined_call_operand.hbm [shape: f32[1,512], index: 3, kind: input, shape index: {}]   ;;  %s1633_s4 = inlined_call_operand.hbm [shape: bf16[512,128], index: 4, kind: input, shape index: {}]   ;;  %s1634_s5 = inlined_call_operand.hbm [shape: f32[1,128], index: 5, kind: input, shape index: {}]   ;;  %s1635_s6 = inlined_call_operand.vmem [shape: f32[16,128], index: 6, kind: output, shape index: {0}]   ;;  %s1636_s7 = inlined_call_operand.vmem [shape: bf16[16,512], index: 7, kind: output, shape index: {1}]  }
   0x1   :  { %14 = vsyncpa [#allocation6], 0 }
   0x2   :  { %15 = vsyncpa [#allocation9], 0 }
   0x3   :  { %16 = vsyncpa [#allocation12], 0  ;;  %s1539_s24 = smov [#allocation5]  }
   0x4   :  { %s34_s25 = sshll.u32 %s1539_s24, 4  ;;  %s35_s25 = int_to_ptr.vmem [resolvable:$true] %s34_s25 }
   0x5   :  { %s1419_s26 = scalar_lea.vmem %s35_s25, 8192  ;;  %p1424_p1 = scmp.lt.s32.totalorder %s35_s25, %s35_s25 }
   0x6   :  { %p1420_p0 = scmp.ne.s32.totalorder %s35_s25, %s1419_s26  ;;  %p1425_p2 = scmp.lt.s32.totalorder %s1419_s26, %s1419_s26 }
   0x8   :  { %p1426_p3 = por %p1425_p2, %p1424_p1 }
   0xa   :  { %p1427_p4 = pnand %p1426_p3, %p1420_p0 }
   0xc   :  { %1430 = shalt.err (!%p1427_p4)
}
   0xd   :  { %s1540_s27 = smov 256   ;;  %s1541_s28 = smov 16  }
   0xe   :  { %40 = dma.hbm_to_vmem [thread:$0]  %s1630_s1, 8192, %s35_s25, [#allocation6], %s1540_s27, %s1540_s27, %s1541_s28  }
   0xf   :  { %s1542_s8 = smov [#allocation8]   ;;  %s1543_s10 = smov [#allocation3]  }
  0x10   :  { %s57_s9 = sshll.u32 %s1542_s8, 4  ;;  %s22_s11 = sshll.u32 %s1543_s10, 4  ;;  %s58_s9 = int_to_ptr.vmem [resolvable:$true] %s57_s9  ;;  %s23_s11 = int_to_ptr.vmem [resolvable:$true] %s22_s11 }
  0x11   :  { %s1439_s12 = scalar_lea.vmem %s58_s9, 64  ;;  %p1444_p6 = scmp.lt.s32.totalorder %s58_s9, %s58_s9 }
  0x12   :  { %p1440_p5 = scmp.ne.s32.totalorder %s58_s9, %s1439_s12  ;;  %p1445_p7 = scmp.lt.s32.totalorder %s1439_s12, %s1439_s12 }
  0x14   :  { %p1446_p8 = por %p1445_p7, %p1444_p6 }
  0x16   :  { %p1447_p9 = pnand %p1446_p8, %p1440_p5 }
  0x18   :  { %1450 = shalt.err (!%p1447_p9)
}
  0x19   :  { %60 = dma.hbm_to_vmem [thread:$0]  %s1632_s3, 64, %s58_s9, [#allocation9]  }
  0x1a   :  { %s1459_s15 = scalar_lea.vmem %s23_s11, 256  ;;  %p1464_p11 = scmp.lt.s32.totalorder %s23_s11, %s23_s11 }
  0x1b   :  { %p1460_p10 = scmp.ne.s32.totalorder %s23_s11, %s1459_s15  ;;  %p1465_p12 = scmp.lt.s32.totalorder %s1459_s15, %s1459_s15 }
  0x1d   :  { %p1466_p13 = por %p1465_p12, %p1464_p11 }
  0x1f   :  { %p1467_p0 = pnand %p1466_p13, %p1460_p10 }
  0x21   :  { %1470 = shalt.err (!%p1467_p0)
}
  0x22   :  { %s1544_s1 = smov 128   ;;  %s1545_s16 = smov 8  }
  0x23   :  { %28 = dma.hbm_to_vmem [thread:$0]  %s1629_s0, 256, %s23_s11, [#allocation4], %s1544_s1, %s1544_s1, %s1545_s16  }
  0x24   :  { %s1546_s19 = smov [#allocation7]   ;;  %s1547_s21 = smov [#allocation10]  }
  0x25   :  { %s47_s20 = sshll.u32 %s1546_s19, 4  ;;  %s66_s22 = sshll.u32 %s1547_s21, 4  ;;  %s48_s20 = int_to_ptr.vmem [resolvable:$true] %s47_s20  ;;  %s67_s22 = int_to_ptr.vmem [resolvable:$true] %s66_s22 }
  0x26   :  { %s1479_s3 = scalar_lea.vmem %s48_s20, 64  ;;  %p1484_p2 = scmp.lt.s32.totalorder %s48_s20, %s48_s20 }
  0x27   :  { %p1480_p1 = scmp.ne.s32.totalorder %s48_s20, %s1479_s3  ;;  %p1485_p3 = scmp.lt.s32.totalorder %s1479_s3, %s1479_s3 }
  0x29   :  { %p1486_p4 = por %p1485_p3, %p1484_p2 }
  0x2b   :  { %p1487_p5 = pnand %p1486_p4, %p1480_p1 }
  0x2d   :  { %1490 = shalt.err (!%p1487_p5)
}
  0x2e   :  { %50 = dma.hbm_to_vmem [thread:$0]  %s1631_s2, 64, %s48_s20, [#allocation6]  }
  0x2f   :  { %s1499_s25 = scalar_lea.vmem %s67_s22, 4096  ;;  %p1504_p7 = scmp.lt.s32.totalorder %s67_s22, %s67_s22 }
  0x30   :  { %p1500_p6 = scmp.ne.s32.totalorder %s67_s22, %s1499_s25  ;;  %p1505_p8 = scmp.lt.s32.totalorder %s1499_s25, %s1499_s25 }
  0x32   :  { %p1506_p9 = por %p1505_p8, %p1504_p7 }
  0x34   :  { %p1507_p10 = pnand %p1506_p9, %p1500_p6 }
  0x36   :  { %1510 = shalt.err (!%p1507_p10)
}
  0x37   :  { %s1548_s0 = smov 64   ;;  %s1549_s26 = smov 4  }
  0x38   :  { %72 = dma.hbm_to_vmem [thread:$0]  %s1633_s4, 4096, %s67_s22, [#allocation9], %s1548_s0, %s1548_s0, %s1549_s26  }
  0x39   :  { %s1550_s29 = smov [#allocation11]  }
  0x3a   :  { %s79_s30 = sshll.u32 %s1550_s29, 4  ;;  %s80_s30 = int_to_ptr.vmem [resolvable:$true] %s79_s30 }
  0x3b   :  { %s1519_s8 = scalar_lea.vmem %s80_s30, 16  ;;  %s1523_s2 = scalar_lea.vmem %s80_s30, 32 }
  0x3c   :  { %p1520_p11 = scmp.ne.s32.totalorder %s80_s30, %s1519_s8  ;;  %p1524_p12 = scmp.lt.s32.totalorder %s80_s30, %s80_s30 }
  0x3d   :  { %p1525_p13 = scmp.lt.s32.totalorder %s1523_s2, %s1519_s8 }
  0x3f   :  { %p1526_p0 = por %p1525_p13, %p1524_p12 }
  0x41   :  { %p1527_p1 = pnand %p1526_p0, %p1520_p11 }
  0x43   :  { %1530 = shalt.err (!%p1527_p1)
}
  0x44   :  { %82 = dma.hbm_to_vmem [thread:$0]  %s1634_s5, 16, %s80_s30, [#allocation12]  }
  0x45   :  { %1531 = dma.done.wait [#allocation4], 256  }
  0x46   :  { %1532 = vsyncadd [#allocation4], 4294967040 }
  0x47   :  { %1533 = dma.done.wait [#allocation6], 8256  }
  0x48   :  { %1534 = vsyncadd [#allocation6], 4294959040 }
  0x49   :  { %1535 = dma.done.wait [#allocation9], 4160  }
  0x4a   :  { %1536 = vsyncadd [#allocation9], 4294963136 }
  0x4b   :  { %1537 = dma.done.wait [#allocation12], 16  }
  0x4c   :  { %1538 = vsyncadd [#allocation12], 4294967280  ;;  %v1272_v0 = vld [vmem:[#allocation5 + $0xe4] ss:$16 sps:$4 sm:$0xff]   ;;  %v1274_v1 = vld [vmem:[#allocation5 + $0xec] ss:$16 sps:$4 sm:$0xff]  }
  0x4d   :  { %518 = vmatprep.subr.bf16.mxu0 %v1272_v0  ;;  %v1276_v2 = vld [vmem:[#allocation5 + $0xe0] ss:$16 sps:$4 sm:$0xff]   ;;  %v1277_v3 = vld [vmem:[#allocation5 + $0xe8] ss:$16 sps:$4 sm:$0xff]   ;;  %561 = vmatprep.subr.bf16.mxu1 %v1274_v1  ;;  %v1278_v4 = vld [vmem:[#allocation5 + $0xc4] ss:$16 sps:$4 sm:$0xff]  }
  0x4e   :  { %519 = vmatpush1.bf16.msra.mxu0 %v1276_v2  ;;  %562 = vmatpush1.bf16.msra.mxu1 %v1277_v3  ;;  %v1280_v5 = vld [vmem:[#allocation5 + $0xcc] ss:$16 sps:$4 sm:$0xff]   ;;  %v1282_v6 = vld [vmem:[#allocation5 + $0xc0] ss:$16 sps:$4 sm:$0xff]   ;;  %v1283_v7 = vld [vmem:[#allocation5 + $0xc8] ss:$16 sps:$4 sm:$0xff]  }
  0x4f   :  { %520 = vmatprep.subr.bf16.mxu0 %v1278_v4  ;;  %563 = vmatprep.subr.bf16.mxu1 %v1280_v5  ;;  %v1284_v8 = vld [vmem:[#allocation5 + $0xa4] ss:$16 sps:$4 sm:$0xff]   ;;  %v1286_v9 = vld [vmem:[#allocation5 + $0xac] ss:$16 sps:$4 sm:$0xff]   ;;  %v1288_v10 = vld [vmem:[#allocation5 + $0xa0] ss:$16 sps:$4 sm:$0xff]  }
  0x50   :  { %v1289_v11 = vld [vmem:[#allocation5 + $0xa8] ss:$16 sps:$4 sm:$0xff]   ;;  %v1290_v12 = vld [vmem:[#allocation5 + $0x84] ss:$16 sps:$4 sm:$0xff]   ;;  %v1292_v13 = vld [vmem:[#allocation5 + $0x8c] ss:$16 sps:$4 sm:$0xff]  }
  0x51   :  { %v1294_v14 = vld [vmem:[#allocation5 + $0x80] ss:$16 sps:$4 sm:$0xff]   ;;  %v1295_v15 = vld [vmem:[#allocation5 + $0x88] ss:$16 sps:$4 sm:$0xff]   ;;  %v1296_v16 = vld [vmem:[#allocation5 + $0x64] ss:$16 sps:$4 sm:$0xff]  }
  0x52   :  { %521 = vmatpush1.bf16.msra.mxu0 %v1282_v6  ;;  %564 = vmatpush1.bf16.msra.mxu1 %v1283_v7  ;;  %v1298_v17 = vld [vmem:[#allocation5 + $0x6c] ss:$16 sps:$4 sm:$0xff]   ;;  %v1300_v18 = vld [vmem:[#allocation5 + $0x60] ss:$16 sps:$4 sm:$0xff]   ;;  %v1301_v19 = vld [vmem:[#allocation5 + $0x68] ss:$16 sps:$4 sm:$0xff]  }
  0x53   :  { %522 = vmatprep.subr.bf16.mxu0 %v1284_v8  ;;  %565 = vmatprep.subr.bf16.mxu1 %v1286_v9  ;;  %v1302_v20 = vld [vmem:[#allocation5 + $0x44] ss:$16 sps:$4 sm:$0xff]   ;;  %v1304_v21 = vld [vmem:[#allocation5 + $0x4c] ss:$16 sps:$4 sm:$0xff]   ;;  %v1306_v22 = vld [vmem:[#allocation5 + $0x40] ss:$16 sps:$4 sm:$0xff]  }
  0x54   :  { %v1307_v23 = vld [vmem:[#allocation5 + $0x48] ss:$16 sps:$4 sm:$0xff]   ;;  %v1308_v24 = vld [vmem:[#allocation5 + $0x24] ss:$16 sps:$4 sm:$0xff]   ;;  %v1310_v25 = vld [vmem:[#allocation5 + $0x2c] ss:$16 sps:$4 sm:$0xff]  }
  0x55   :  { %v1312_v26 = vld [vmem:[#allocation5 + $0x20] ss:$16 sps:$4 sm:$0xff]   ;;  %v1313_v27 = vld [vmem:[#allocation5 + $0x28] ss:$16 sps:$4 sm:$0xff]   ;;  %v1314_v28 = vld [vmem:[#allocation5 + $0x4] ss:$16 sps:$4 sm:$0xff]  }
  0x56   :  { %523 = vmatpush1.bf16.msra.mxu0 %v1288_v10  ;;  %566 = vmatpush1.bf16.msra.mxu1 %v1289_v11  ;;  %v1316_v29 = vld [vmem:[#allocation5 + $0xc] ss:$16 sps:$4 sm:$0xff]   ;;  %v1318_v30 = vld [vmem:[#allocation5] ss:$16 sps:$4 sm:$0xff]   ;;  %v1319_v31 = vld [vmem:[#allocation5 + $0x8] ss:$16 sps:$4 sm:$0xff]  }
  0x57   :  { %524 = vmatprep.subr.bf16.mxu0 %v1290_v12  ;;  %567 = vmatprep.subr.bf16.mxu1 %v1292_v13  ;;  %v1320_v32 = vld [vmem:[#allocation5 + $0x1e4] ss:$16 sps:$4 sm:$0xff]   ;;  %v1322_v33 = vld [vmem:[#allocation5 + $0x1ec] ss:$16 sps:$4 sm:$0xff]   ;;  %v1324_v34 = vld [vmem:[#allocation5 + $0x1e0] ss:$16 sps:$4 sm:$0xff]  }
  0x58   :  { %v1325_v35 = vld [vmem:[#allocation5 + $0x1e8] ss:$16 sps:$4 sm:$0xff]   ;;  %v1326_v36 = vld [vmem:[#allocation5 + $0x1c4] ss:$16 sps:$4 sm:$0xff]   ;;  %v1328_v37 = vld [vmem:[#allocation5 + $0x1cc] ss:$16 sps:$4 sm:$0xff]  }
  0x59   :  { %v1330_v38 = vld [vmem:[#allocation5 + $0x1c0] ss:$16 sps:$4 sm:$0xff]   ;;  %v1331_v39 = vld [vmem:[#allocation5 + $0x1c8] ss:$16 sps:$4 sm:$0xff]   ;;  %v1332_v40 = vld [vmem:[#allocation5 + $0x1a4] ss:$16 sps:$4 sm:$0xff]  }
  0x5a   :  { %525 = vmatpush1.bf16.msra.mxu0 %v1294_v14  ;;  %568 = vmatpush1.bf16.msra.mxu1 %v1295_v15  ;;  %v1334_v41 = vld [vmem:[#allocation5 + $0x1ac] ss:$16 sps:$4 sm:$0xff]   ;;  %v1336_v42 = vld [vmem:[#allocation5 + $0x1a0] ss:$16 sps:$4 sm:$0xff]   ;;  %v1337_v43 = vld [vmem:[#allocation5 + $0x1a8] ss:$16 sps:$4 sm:$0xff]  }
  0x5b   :  { %526 = vmatprep.subr.bf16.mxu0 %v1296_v16  ;;  %569 = vmatprep.subr.bf16.mxu1 %v1298_v17  ;;  %v1338_v44 = vld [vmem:[#allocation5 + $0x184] ss:$16 sps:$4 sm:$0xff]   ;;  %v1340_v45 = vld [vmem:[#allocation5 + $0x18c] ss:$16 sps:$4 sm:$0xff]   ;;  %v1342_v46 = vld [vmem:[#allocation5 + $0x180] ss:$16 sps:$4 sm:$0xff]  }
  0x5c   :  { %v1343_v47 = vld [vmem:[#allocation5 + $0x188] ss:$16 sps:$4 sm:$0xff]   ;;  %v1370_v48 = vld [vmem:[#allocation3 + $0x4] ss:$8 sps:$4 sm:$0xff]   ;;  %v1348_v51 = vld [vmem:[#allocation5 + $0x160] ss:$16 sps:$4 sm:$0xff]  }
  0x5d   :  { %v1344_v49 = vld [vmem:[#allocation5 + $0x164] ss:$16 sps:$4 sm:$0xff]   ;;  %v1346_v50 = vld [vmem:[#allocation5 + $0x16c] ss:$16 sps:$4 sm:$0xff]   ;;  %550 = vmatprep.mubr.bf16.mxu0 %v1370_v48  ;;  %593 = vmatprep.mubr.bf16.mxu1 %v1370_v48  ;;  %v1349_v52 = vld [vmem:[#allocation5 + $0x168] ss:$16 sps:$4 sm:$0xff]  }
  0x5e   :  { %527 = vmatpush1.bf16.msra.mxu0 %v1300_v18  ;;  %570 = vmatpush1.bf16.msra.mxu1 %v1301_v19  ;;  %v1350_v53 = vld [vmem:[#allocation5 + $0x144] ss:$16 sps:$4 sm:$0xff]   ;;  %v1352_v54 = vld [vmem:[#allocation5 + $0x14c] ss:$16 sps:$4 sm:$0xff]   ;;  %v1354_v55 = vld [vmem:[#allocation5 + $0x140] ss:$16 sps:$4 sm:$0xff]  }
  0x5f   :  { %528 = vmatprep.subr.bf16.mxu0 %v1302_v20  ;;  %571 = vmatprep.subr.bf16.mxu1 %v1304_v21  ;;  %v1355_v56 = vld [vmem:[#allocation5 + $0x148] ss:$16 sps:$4 sm:$0xff]   ;;  %v1356_v57 = vld [vmem:[#allocation5 + $0x124] ss:$16 sps:$4 sm:$0xff]   ;;  %v1358_v58 = vld [vmem:[#allocation5 + $0x12c] ss:$16 sps:$4 sm:$0xff]  }
  0x60   :  { %v1360_v59 = vld [vmem:[#allocation5 + $0x120] ss:$16 sps:$4 sm:$0xff]   ;;  %v1361_v60 = vld [vmem:[#allocation5 + $0x128] ss:$16 sps:$4 sm:$0xff]   ;;  %v1362_v61 = vld [vmem:[#allocation5 + $0x104] ss:$16 sps:$4 sm:$0xff]  }
  0x61   :  { %v1364_v62 = vld [vmem:[#allocation5 + $0x10c] ss:$16 sps:$4 sm:$0xff]   ;;  %v1366_v63 = vld [vmem:[#allocation5 + $0x100] ss:$16 sps:$4 sm:$0xff]   ;;  %v1367_v0 = vld [vmem:[#allocation5 + $0x108] ss:$16 sps:$4 sm:$0xff]  }
  0x62   :  { %529 = vmatpush1.bf16.msra.mxu0 %v1306_v22  ;;  %572 = vmatpush1.bf16.msra.mxu1 %v1307_v23  ;;  %v1371_v1 = vld [vmem:[#allocation10 + $0x78] sm:$0xff]   ;;  %v1368_v3 = vld [vmem:[#allocation3] ss:$8 sps:$4 sm:$0xff]   ;;  %v1383_v14 = vld [vmem:[#allocation10 + $0x60] sm:$0xff]  }
  0x63   :  { %530 = vmatprep.subr.bf16.mxu0 %v1308_v24  ;;  %573 = vmatprep.subr.bf16.mxu1 %v1310_v25  ;;  %v1372_v2 = vld [vmem:[#allocation10 + $0xf8] sm:$0xff]   ;;  %v1375_v6 = vld [vmem:[#allocation10 + $0x70] sm:$0xff]   ;;  %v1379_v10 = vld [vmem:[#allocation10 + $0x68] sm:$0xff]  }
  0x64   :  { %v1373_v4 = vld [vmem:[#allocation10 + $0x38] sm:$0xff]   ;;  %v1376_v7 = vld [vmem:[#allocation10 + $0xf0] sm:$0xff]   ;;  %v1380_v11 = vld [vmem:[#allocation10 + $0xe8] sm:$0xff]  }
  0x65   :  { %v1374_v5 = vld [vmem:[#allocation10 + $0xb8] sm:$0xff]   ;;  %v1377_v8 = vld [vmem:[#allocation10 + $0x30] sm:$0xff]   ;;  %v1381_v12 = vld [vmem:[#allocation10 + $0x28] sm:$0xff]  }
  0x66   :  { %531 = vmatpush1.bf16.msra.mxu0 %v1312_v26  ;;  %574 = vmatpush1.bf16.msra.mxu1 %v1313_v27  ;;  %v1378_v9 = vld [vmem:[#allocation10 + $0xb0] sm:$0xff]   ;;  %v1382_v13 = vld [vmem:[#allocation10 + $0xa8] sm:$0xff]   ;;  %v1384_v15 = vld [vmem:[#allocation10 + $0xe0] sm:$0xff]  }
  0x67   :  { %532 = vmatprep.subr.bf16.mxu0 %v1314_v28  ;;  %575 = vmatprep.subr.bf16.mxu1 %v1316_v29  ;;  %v1385_v16 = vld [vmem:[#allocation10 + $0x20] sm:$0xff]   ;;  %v1387_v18 = vld [vmem:[#allocation10 + $0x58] sm:$0xff]   ;;  %v1391_v22 = vld [vmem:[#allocation10 + $0x50] sm:$0xff]  }
  0x68   :  { %v1386_v17 = vld [vmem:[#allocation10 + $0xa0] sm:$0xff]   ;;  %v1388_v19 = vld [vmem:[#allocation10 + $0xd8] sm:$0xff]   ;;  %v1392_v23 = vld [vmem:[#allocation10 + $0xd0] sm:$0xff]  }
  0x69   :  { %v1389_v20 = vld [vmem:[#allocation10 + $0x18] sm:$0xff]   ;;  %v1393_v24 = vld [vmem:[#allocation10 + $0x10] sm:$0xff]   ;;  %v1395_v26 = vld [vmem:[#allocation10 + $0x48] sm:$0xff]  }
  0x6a   :  { %533 = vmatpush1.bf16.msra.mxu0 %v1318_v30  ;;  %576 = vmatpush1.bf16.msra.mxu1 %v1319_v31  ;;  %v1390_v21 = vld [vmem:[#allocation10 + $0x98] sm:$0xff]   ;;  %v1394_v25 = vld [vmem:[#allocation10 + $0x90] sm:$0xff]   ;;  %v1396_v27 = vld [vmem:[#allocation10 + $0xc8] sm:$0xff]  }
  0x6b   :  { %534 = vmatprep.subr.bf16.mxu0 %v1320_v32  ;;  %577 = vmatprep.subr.bf16.mxu1 %v1322_v33  ;;  %v1397_v28 = vld [vmem:[#allocation10 + $0x8] sm:$0xff]   ;;  %v1399_v30 = vld [vmem:[#allocation10 + $0x40] sm:$0xff]  }
  0x6c   :  { %v1398_v29 = vld [vmem:[#allocation10 + $0x88] sm:$0xff]   ;;  %v1400_v31 = vld [vmem:[#allocation10 + $0xc0] sm:$0xff]  }
  0x6d   :  { %v1401_v32 = vld [vmem:[#allocation10] sm:$0xff]  }
  0x6e   :  { %535 = vmatpush2.bf16.msra.mxu0 %v1324_v34  ;;  %578 = vmatpush2.bf16.msra.mxu1 %v1325_v35  ;;  %v1402_v33 = vld [vmem:[#allocation10 + $0x80] sm:$0xff]   ;;  %v633_v34 = vlaneseq }
  0x6f   :  { %536 = vmatprep.subr.bf16.mxu0 %v1326_v36  ;;  %579 = vmatprep.subr.bf16.mxu1 %v1328_v37 }
  0x70   :  { %v634_v35 = vshrl.u32 %v633_v34, 7 }
  0x72   :  { %537 = vmatpush2.bf16.msra.mxu0 %v1330_v38  ;;  %580 = vmatpush2.bf16.msra.mxu1 %v1331_v39  ;;  %v635_v36 = vsub.s32 0, %v634_v35  ;;  %v643_v37 = vsub.s32 2, %v634_v35  ;;  %v631_v38 = vld [vmem:[#allocation7] sm:$0xf]  ;;  %v639_v39 = vsub.s32 1, %v634_v35 }
  0x73   :  { %538 = vmatprep.subr.bf16.mxu0 %v1332_v40  ;;  %581 = vmatprep.subr.bf16.mxu1 %v1334_v41  ;;  %v647_v40 = vsub.s32 3, %v634_v35  ;;  %v661_v41 = vld [vmem:[#allocation8] sm:$0xf] }
  0x76   :  { %539 = vmatpush2.bf16.msra.mxu0 %v1336_v42  ;;  %582 = vmatpush2.bf16.msra.mxu1 %v1337_v43  ;;  %v636_v42 = vrot.slane %v631_v38, %v635_v36  ;;  %v644_v43 = vrot.slane %v631_v38, %v643_v37 }
  0x77   :  { %540 = vmatprep.subr.bf16.mxu0 %v1338_v44  ;;  %583 = vmatprep.subr.bf16.mxu1 %v1340_v45  ;;  %v666_v44 = vrot.slane %v661_v41, %v635_v36  ;;  %v674_v45 = vrot.slane %v661_v41, %v643_v37 }
  0x7a   :  { %541 = vmatpush2.bf16.msra.mxu0 %v1342_v46  ;;  %584 = vmatpush2.bf16.msra.mxu1 %v1343_v47  ;;  %v640_v46 = vrot.slane %v631_v38, %v639_v39  ;;  %v648_v47 = vrot.slane %v631_v38, %v647_v40 }
  0x7b   :  { %542 = vmatprep.subr.bf16.mxu0 %v1344_v49  ;;  %585 = vmatprep.subr.bf16.mxu1 %v1346_v50 }
  0x7e   :  { %543 = vmatpush2.bf16.msra.mxu0 %v1348_v51  ;;  %586 = vmatpush2.bf16.msra.mxu1 %v1349_v52  ;;  %v670_v52 = vrot.slane %v661_v41, %v639_v39 }
  0x7f   :  { %544 = vmatprep.subr.bf16.mxu0 %v1350_v53  ;;  %587 = vmatprep.subr.bf16.mxu1 %v1352_v54  ;;  %v678_v53 = vrot.slane %v661_v41, %v647_v40 }
  0x82   :  { %545 = vmatpush2.bf16.msra.mxu0 %v1354_v55  ;;  %588 = vmatpush2.bf16.msra.mxu1 %v1355_v56 }
  0x83   :  { %546 = vmatprep.subr.bf16.mxu0 %v1356_v57  ;;  %589 = vmatprep.subr.bf16.mxu1 %v1358_v58 }
  0x86   :  { %547 = vmatpush2.bf16.msra.mxu0 %v1360_v59  ;;  %590 = vmatpush2.bf16.msra.mxu1 %v1361_v60 }
  0x87   :  { %548 = vmatprep.subr.bf16.mxu0 %v1362_v61  ;;  %591 = vmatprep.subr.bf16.mxu1 %v1364_v62 }
  0x8a   :  { %549 = vmatpush2.bf16.msra.mxu0 %v1366_v63  ;;  %592 = vmatpush2.bf16.msra.mxu1 %v1367_v0 }
  0x8b   :  { %1216 = vmatprep.subr.bf16.mxu0 %v1371_v1  ;;  %1238 = vmatprep.subr.bf16.mxu1 %v1372_v2 }
  0x8d   :  { %551 = vmatmul.mubr.bf16.vlgmr.msra.gmra.mxu0 %v1368_v3  ;;  %594 = vmatmul.mubr.bf16.vlgmr.msra.gmra.mxu1 %v1368_v3 }
  0x8e   :  { %1217 = vmatpush3.bf16.msra.mxu0 %v1373_v4  ;;  %1239 = vmatpush3.bf16.msra.mxu1 %v1374_v5 }
  0x8f   :  { %1218 = vmatprep.subr.bf16.mxu0 %v1375_v6  ;;  %1240 = vmatprep.subr.bf16.mxu1 %v1376_v7 }
  0x92   :  { %1219 = vmatpush3.bf16.msra.mxu0 %v1377_v8  ;;  %1241 = vmatpush3.bf16.msra.mxu1 %v1378_v9 }
  0x93   :  { %1220 = vmatprep.subr.bf16.mxu0 %v1379_v10  ;;  %1242 = vmatprep.subr.bf16.mxu1 %v1380_v11 }
  0x96   :  { %1221 = vmatpush3.bf16.msra.mxu0 %v1381_v12  ;;  %1243 = vmatpush3.bf16.msra.mxu1 %v1382_v13 }
  0x97   :  { %1222 = vmatprep.subr.bf16.mxu0 %v1383_v14  ;;  %1244 = vmatprep.subr.bf16.mxu1 %v1384_v15 }
  0x9a   :  { %1223 = vmatpush3.bf16.msra.mxu0 %v1385_v16  ;;  %1245 = vmatpush3.bf16.msra.mxu1 %v1386_v17 }
  0x9b   :  { %1224 = vmatprep.subr.bf16.mxu0 %v1387_v18  ;;  %1246 = vmatprep.subr.bf16.mxu1 %v1388_v19 }
  0x9e   :  { %1225 = vmatpush3.bf16.msra.mxu0 %v1389_v20  ;;  %1247 = vmatpush3.bf16.msra.mxu1 %v1390_v21 }
  0x9f   :  { %1226 = vmatprep.subr.bf16.mxu0 %v1391_v22  ;;  %1248 = vmatprep.subr.bf16.mxu1 %v1392_v23 }
  0xa2   :  { %1227 = vmatpush3.bf16.msra.mxu0 %v1393_v24  ;;  %1249 = vmatpush3.bf16.msra.mxu1 %v1394_v25 }
  0xa3   :  { %1228 = vmatprep.subr.bf16.mxu0 %v1395_v26  ;;  %1250 = vmatprep.subr.bf16.mxu1 %v1396_v27 }
  0xa6   :  { %1229 = vmatpush3.bf16.msra.mxu0 %v1397_v28  ;;  %1251 = vmatpush3.bf16.msra.mxu1 %v1398_v29  ;;  %v1179_v28 = vld [vmem:[#allocation11] ss:$0 sm:$0xff] }
  0xa7   :  { %1230 = vmatprep.subr.bf16.mxu0 %v1399_v30  ;;  %1252 = vmatprep.subr.bf16.mxu1 %v1400_v31  ;;  %v1073_v31 = vand.u32 127, %v633_v34 }
  0xa9   :  { %vm1074_vm0 = vcmp.lt.s32.totalorder %v1073_v31, 10 }
  0xaa   :  { %1231 = vmatpush3.bf16.msra.mxu0 %v1401_v32  ;;  %1253 = vmatpush3.bf16.msra.mxu1 %v1402_v33 }
 0x14d   :  { %v552_v48 = vpop.f32.mrf.mxu0  ;;  %v595_v49 = vpop.f32.mrf.mxu1 }
 0x14e   :  { %v653_v50 = vmul.f32 %v636_v42, %v552_v48  ;;  %v655_v51 = vmul.f32 %v644_v43, %v595_v49 }
 0x14f   :  { %v554_v54 = vpop.f32.mrf.mxu0  ;;  %v597_v55 = vpop.f32.mrf.mxu1 }
 0x150   :  { %v683_v56 = vadd.f32 %v666_v44, %v653_v50  ;;  %v685_v57 = vadd.f32 %v674_v45, %v655_v51  ;;  %v654_v58 = vmul.f32 %v640_v46, %v554_v54  ;;  %v656_v59 = vmul.f32 %v648_v47, %v597_v55 }
 0x151   :  { %v556_v60 = vpop.f32.mrf.mxu0  ;;  %v599_v61 = vpop.f32.mrf.mxu1 }
 0x152   :  { %v693_v62 = vmax.f32 %v685_v57, 0.0  ;;  %v684_v63 = vadd.f32 %v670_v52, %v654_v58  ;;  %v686_v0 = vadd.f32 %v678_v53, %v656_v59  ;;  %v691_v1 = vmax.f32 %v683_v56, 0.0 }
 0x153   :  { %v657_v2 = vmul.f32 %v636_v42, %v556_v60  ;;  %v659_v3 = vmul.f32 %v644_v43, %v599_v61  ;;  %v558_v4 = vpop.f32.mrf.mxu0  ;;  %v601_v5 = vpop.f32.mrf.mxu1 }
 0x154   :  { %v692_v6 = vmax.f32 %v684_v63, 0.0  ;;  %v694_v7 = vmax.f32 %v686_v0, 0.0  ;;  %v658_v8 = vmul.f32 %v640_v46, %v558_v4  ;;  %v660_v9 = vmul.f32 %v648_v47, %v601_v5 }
 0x155   :  { %v687_v10 = vadd.f32 %v666_v44, %v657_v2  ;;  %v689_v11 = vadd.f32 %v674_v45, %v659_v3 }
 0x156   :  { %v1212_v12 = vpack.c.bf16 %v692_v6, %v691_v1  ;;  %v1213_v13 = vpack.c.bf16 %v694_v7, %v693_v62  ;;  %v688_v14 = vadd.f32 %v670_v52, %v658_v8  ;;  %v690_v15 = vadd.f32 %v678_v53, %v660_v9 }
 0x157   :  { %v695_v16 = vmax.f32 %v687_v10, 0.0  ;;  %v697_v17 = vmax.f32 %v689_v11, 0.0 }
 0x158   :  { %723 = vst [vmem:[%s1636_s7] sm:$0xff] %v1212_v12  ;;  %724 = vst [vmem:[%s1636_s7 + $0x8] sm:$0xff] %v1213_v13  ;;  %v696_v18 = vmax.f32 %v688_v14, 0.0  ;;  %v698_v19 = vmax.f32 %v690_v15, 0.0 }
 0x159   :  { %v699_v24 = vpack.c.bf16 %v695_v16, %v691_v1  ;;  %v701_v25 = vpack.c.bf16 %v697_v17, %v693_v62 }
 0x15a   :  { %v1214_v20 = vpack.c.bf16 %v696_v18, %v695_v16  ;;  %v1215_v21 = vpack.c.bf16 %v698_v19, %v697_v17  ;;  %v700_v22 = vpack.c.bf16 %v696_v18, %v692_v6  ;;  %v702_v23 = vpack.c.bf16 %v698_v19, %v694_v7 }
 0x15c   :  { %725 = vst [vmem:[%s1636_s7 + $0x10] sm:$0xff] %v1214_v20  ;;  %726 = vst [vmem:[%s1636_s7 + $0x18] sm:$0xff] %v1215_v21  ;;  %1022 = vmatprep.mubr.bf16.mxu0 %v700_v22  ;;  %1063 = vmatprep.mubr.bf16.mxu1 %v702_v23 }
 0x15d   :  { %1023 = vmatmul.mubr.bf16.vlgmr.msra.gmra.mxu0 %v699_v24  ;;  %1064 = vmatmul.mubr.bf16.vlgmr.msra.gmra.mxu1 %v701_v25 }
 0x21d   :  { %v1232_v26 = vpop.f32.mrf.mxu0  ;;  %v1254_v27 = vpop.f32.mrf.mxu1 }
 0x21f   :  { %v1233_v29 = vpop.f32.mrf.mxu0  ;;  %v1255_v30 = vpop.f32.mrf.mxu1 }
 0x220   :  { %v1234_v32 = vadd.f32 %v1233_v29, %v1232_v26  ;;  %v1256_v37 = vadd.f32 %v1255_v30, %v1254_v27 }
 0x221   :  { %v1235_v33 = vpop.f32.mrf.mxu0  ;;  %v1257_v35 = vpop.f32.mrf.mxu1 }
 0x222   :  { %v1025_v36 = vadd.f32 %v1234_v32, %v1179_v28 }
 0x223   :  { %v1236_v38 = vpop.f32.mrf.mxu0  ;;  %v1258_v39 = vpop.f32.mrf.mxu1 }
 0x224   :  { %v1237_v40 = vadd.f32 %v1236_v38, %v1235_v33  ;;  %v1066_v41 = vadd.f32 %v1256_v37, %v1025_v36  ;;  %v1259_v43 = vadd.f32 %v1258_v39, %v1257_v35 }
 0x226   :  { %v1028_v42 = vadd.f32 %v1237_v40, %v1179_v28  ;;  %v1075_v44 = vsel %vm1074_vm0, %v1066_v41, -1e+30 }
 0x227   :  { %1077 = vmax.xlane.f32.xlu0 %v1075_v44 }
 0x228   :  { %v1069_v45 = vadd.f32 %v1259_v43, %v1028_v42 }
 0x22a   :  { %v1076_v46 = vsel %vm1074_vm0, %v1069_v45, -1e+30 }
 0x22b   :  { %1079 = vmax.xlane.f32.xlu0 %v1076_v46 }
 0x2b0   :  { %v1078_v47 = vpop.xlane.xlu0 %1077 }
 0x2b1   :  { %v1081_v48 = vsub.f32 %v1075_v44, %v1078_v47 }
 0x2b3   :  { %v1083_v34 = vmul.f32 1.442695, %v1081_v48 }
 0x2b4   :  { %v1080_v49 = vpop.xlane.xlu0 %1079 }
 0x2b5   :  { %1403 = vpow2.f32 %v1083_v34  ;;  %v1082_v50 = vsub.f32 %v1076_v46, %v1080_v49 }
 0x2b7   :  { %v1085_v51 = vmul.f32 1.442695, %v1082_v50 }
 0x2b9   :  { %1405 = vpow2.f32 %v1085_v51 }
 0x2c2   :  { %v1404_v52 = vpop.eup %1403 }
 0x2c3   :  { %1087 = vadd.xlane.f32.xlu1 %v1404_v52 }
 0x2c6   :  { %v1406_v53 = vpop.eup %1405 }
 0x2c7   :  { %1089 = vadd.xlane.f32.xlu1 %v1406_v53 }
 0x34c   :  { %v1088_v54 = vpop.xlane.xlu1 %1087 }
 0x34d   :  { %1407 = vrcp.f32 %v1088_v54 }
 0x350   :  { %v1090_v55 = vpop.xlane.xlu1 %1089 }
 0x351   :  { %1409 = vrcp.f32 %v1090_v55 }
 0x35a   :  { %v1408_v56 = vpop.eup %1407 }
 0x35b   :  { %v1092_v57 = vmul.f32 %v1408_v56, %v1404_v52 }
 0x35d   :  { %1095 = vst [vmem:[%s1635_s6] sm:$0xff] %v1092_v57 }
 0x35e   :  { %v1410_v58 = vpop.eup %1409 }
 0x35f   :  { %v1094_v59 = vmul.f32 %v1410_v58, %v1406_v53 }
 0x361   :  { %1096 = vst [vmem:[%s1635_s6 + $0x8] sm:$0xff] %v1094_v59 }
 0x362   :  { %1105 = vsyncpa [#allocation4], 1 }
 0x363   :  { %1106 = vsyncpa [#allocation6], 1 }
 0x364   :  { %1107 = vsyncpa [#allocation9], 1 }
 0x365   :  { %1108 = vsyncpa [#allocation12], 1 }

</bundles_post_ra>
